<compile_context>
chip_gen: v7x
topology: tpu7x:2x2x1
jax: 0.10.0
libtpu: 0.0.40
codegen_flags: <defaults>
</compile_context>

<pallas_src>
import jax
import jax.numpy as jnp
from jax.experimental import pallas as pl
from jax.experimental.pallas import tpu as pltpu

EPS = 1e-5


def _round_up(x, m):
    return ((x + m - 1) // m) * m


# ---------------------------------------------------------------------------
# Fused single-sweep kernel: one (N, TD) feature tile resident in VMEM.
# ---------------------------------------------------------------------------
def _fused_bn_kernel(x_ref, gamma_ref, beta_ref, o_ref):
    x = x_ref[...]                                    # (N, TD), native dtype
    xf = x.astype(jnp.float32)
    inv_n = 1.0 / x.shape[0]

    # Single-pass stats: avoids materializing a centered full-tile temporary.
    mean = jnp.sum(xf, axis=0, keepdims=True) * inv_n                 # (1, TD)
    var = jnp.sum(xf * xf, axis=0, keepdims=True) * inv_n - mean * mean
    var = jnp.maximum(var, 0.0)                  # guard f32 cancellation
    inv_std = jax.lax.rsqrt(var + EPS)           # EUP slot

    # Fold the affine: y = x * scale + shift (one mul-add per element).
    scale = gamma_ref[...].astype(jnp.float32) * inv_std              # (1, TD)
    shift = beta_ref[...].astype(jnp.float32) - mean * scale          # (1, TD)

    if o_ref.dtype == jnp.float32:
        o_ref[...] = (xf * scale + shift).astype(o_ref.dtype)
    else:
        # bf16-capable VPU path: apply in the native dtype so the write path
        # never materializes a second f32 copy of the tile.
        o_ref[...] = (x * scale.astype(x.dtype)
                      + shift.astype(x.dtype)).astype(o_ref.dtype)


# ---------------------------------------------------------------------------
# Large-N fallback: two-pass, N-tiled reduction + elementwise apply.
# ---------------------------------------------------------------------------
def _make_stats_kernel(n_total, tn):
    def stats_kernel(x_ref, sum_ref, sq_ref):
        ni = pl.program_id(1)

        @pl.when(ni == 0)
        def _():
            sum_ref[...] = jnp.zeros_like(sum_ref)
            sq_ref[...] = jnp.zeros_like(sq_ref)

        x = x_ref[...].astype(jnp.float32)                        # (TN, TD)
        # Zero rows of the (masked) ragged tail batch block so they cannot
        # leak into the reduction over the batch axis.
        row = jax.lax.broadcasted_iota(jnp.int32, x.shape, 0) + ni * tn
        x = jnp.where(row < n_total, x, 0.0)
        sum_ref[...] += jnp.sum(x, axis=0, keepdims=True)
        sq_ref[...] += jnp.sum(x * x, axis=0, keepdims=True)

    return stats_kernel


def _apply_kernel(x_ref, scale_ref, shift_ref, o_ref):
    x = x_ref[...]
    if o_ref.dtype == jnp.float32:
        o_ref[...] = (x.astype(jnp.float32) * scale_ref[...]
                      + shift_ref[...]).astype(o_ref.dtype)
    else:
        o_ref[...] = (x * scale_ref[...].astype(x.dtype)
                      + shift_ref[...].astype(x.dtype)).astype(o_ref.dtype)


def _two_pass_bn(x, gamma, beta, tn, td, vmem_limit_bytes):
    N, D = x.shape
    itemsize = jnp.dtype(x.dtype).itemsize

    sums, sqs = pl.pallas_call(
        _make_stats_kernel(N, tn),
        out_shape=(jax.ShapeDtypeStruct((1, D), jnp.float32),
                   jax.ShapeDtypeStruct((1, D), jnp.float32)),
        grid_spec=pl.GridSpec(
            grid=(pl.cdiv(D, td), pl.cdiv(N, tn)),     # reduction (N) axis last
            in_specs=[pl.BlockSpec((tn, td), lambda j, i: (i, j))],
            out_specs=(pl.BlockSpec((1, td), lambda j, i: (0, j)),
                       pl.BlockSpec((1, td), lambda j, i: (0, j))),
        ),
        compiler_params=pltpu.CompilerParams(
            dimension_semantics=("parallel", "arbitrary"),
            vmem_limit_bytes=vmem_limit_bytes),
        cost_estimate=pl.CostEstimate(
            flops=4 * N * D, transcendentals=0,
            bytes_accessed=N * D * itemsize + 8 * D),
    )(x)

    # Tiny (1, D) per-feature math stays in plain JAX.
    inv_n = 1.0 / N
    mean = sums * inv_n
    var = jnp.maximum(sqs * inv_n - mean * mean, 0.0)
    inv_std = jax.lax.rsqrt(var + EPS)
    scale = gamma.reshape(1, D).astype(jnp.float32) * inv_std
    shift = beta.reshape(1, D).astype(jnp.float32) - mean * scale

    return pl.pallas_call(
        _apply_kernel,
        out_shape=jax.ShapeDtypeStruct((N, D), x.dtype),
        grid_spec=pl.GridSpec(
            grid=(pl.cdiv(N, tn), pl.cdiv(D, td)),
            in_specs=[pl.BlockSpec((tn, td), lambda i, j: (i, j)),
                      pl.BlockSpec((1, td), lambda i, j: (0, j)),
                      pl.BlockSpec((1, td), lambda i, j: (0, j))],
            out_specs=pl.BlockSpec((tn, td), lambda i, j: (i, j)),
        ),
        compiler_params=pltpu.CompilerParams(
            dimension_semantics=("parallel", "parallel"),
            vmem_limit_bytes=vmem_limit_bytes),
        cost_estimate=pl.CostEstimate(
            flops=2 * N * D, transcendentals=0,
            bytes_accessed=2 * N * D * itemsize + 8 * D),
    )(x, scale, shift)


# ---------------------------------------------------------------------------
# Wrapper
# ---------------------------------------------------------------------------
def linear_batch_norm(x, gamma, beta, *, max_td=1024,
                      vmem_budget_bytes=40 * 1024 * 1024,
                      vmem_limit_bytes=64 * 1024 * 1024,
                      force_two_pass=False):
    """x: (N, D); gamma/beta: (D,). BatchNorm2d training-mode forward
    (f32 stats, biased variance, eps=1e-5); output in x.dtype."""
    N, D = x.shape
    itemsize = jnp.dtype(x.dtype).itemsize

    # Honest per-grid-step footprint of the fused kernel: double-buffered
    # input + output tiles (native dtype) + in-kernel f32 copy + one f32 temp.
    def fused_footprint(td):
        return 4 * N * td * itemsize + 2 * N * td * 4

    # Lane-dense tile-width candidates (multiples of 128, never wider than the
    # rounded-up feature dim), largest first.  D <= 128 uses the full dim.
    if D <= 128:
        candidates = [D]
    else:
        top = min(_round_up(D, 128), _round_up(max_td, 128))
        candidates = list(range(top, 0, -128))

    td = next((c for c in candidates
               if fused_footprint(c) <= vmem_budget_bytes), None)

    if force_two_pass or td is None:
        # Even a 128-lane tile (plus temporaries) overflows VMEM at this N:
        # two-pass N-tiled reduction.  One extra HBM read of x (3 passes vs 2)
        # but correct and still mem-bound-efficient at any batch size.
        td_fb = min(_round_up(D, 128), 512) if D > 128 else D
        tn = min(_round_up(N, 8), 1024)

        def fb_footprint(tn_, td_):
            stats = 2 * tn_ * td_ * itemsize + 2 * tn_ * td_ * 4
            apply = 4 * tn_ * td_ * itemsize + tn_ * td_ * 4
            return max(stats, apply)

        while tn > 8 and fb_footprint(tn, td_fb) > vmem_budget_bytes:
            tn = max(8, (tn // 2) // 8 * 8)
        while td_fb > 128 and fb_footprint(tn, td_fb) > vmem_budget_bytes:
            td_fb -= 128
        return _two_pass_bn(x, gamma, beta, tn, td_fb, vmem_limit_bytes)

    # Short-grid balance heuristic (v7x has 2 TensorCores): prefer an even
    # number of "parallel" grid steps when halving the tile keeps lanes dense.
    steps = pl.cdiv(D, td)
    if (1 < steps < 8 and steps % 2 == 1 and td >= 256
            and (td // 2) % 128 == 0 and pl.cdiv(D, td // 2) % 2 == 0):
        td //= 2
        steps = pl.cdiv(D, td)

    gamma2d = gamma.reshape(1, D)
    beta2d = beta.reshape(1, D)

    cost = pl.CostEstimate(
        flops=6 * N * D,
        transcendentals=D,
        bytes_accessed=2 * N * D * itemsize + 2 * D * itemsize + 2 * D * 4,
    )

    # NOTE: on v6e (128 MiB VMEM), if a trace shows exposed DMA at tile
    # boundaries, pipeline_mode=pl.Buffered(3) on x's in_spec is a cheap
    # few-% win; skipped by default to keep v5e/v7x VMEM headroom.
    return pl.pallas_call(
        _fused_bn_kernel,
        out_shape=jax.ShapeDtypeStruct((N, D), x.dtype),
        grid_spec=pl.GridSpec(
            grid=(steps,),
            in_specs=[
                pl.BlockSpec((N, td), lambda j: (0, j)),
                pl.BlockSpec((1, td), lambda j: (0, j)),
                pl.BlockSpec((1, td), lambda j: (0, j)),
            ],
            out_specs=pl.BlockSpec((N, td), lambda j: (0, j)),
        ),
        compiler_params=pltpu.CompilerParams(
            dimension_semantics=("parallel",),
            vmem_limit_bytes=vmem_limit_bytes),
        cost_estimate=cost,
    )(x, gamma2d, beta2d)


def _reference(x, gamma, beta):
    xf = x.astype(jnp.float32)
    mean = jnp.mean(xf, axis=0, keepdims=True)
    var = jnp.mean((xf - mean) ** 2, axis=0, keepdims=True)
    y = ((xf - mean) / jnp.sqrt(var + EPS)
         * gamma[None, :].astype(jnp.float32)
         + beta[None, :].astype(jnp.float32))
    return y.astype(x.dtype)


if __name__ == "__main__":
    key = jax.random.PRNGKey(0)

    # Case 1: the module's typical small head shape (D < 128 -> one full-width
    # block, lane-partial masked stores).
    N1, D1 = 8, 32
    x1 = jax.random.normal(key, (N1, D1), dtype=jnp.float32)
    g1 = jnp.ones((D1,), jnp.float32)     # BatchNorm2d default weight init
    b1 = jnp.zeros((D1,), jnp.float32)    # BatchNorm2d default bias init
    out1 = jax.block_until_ready(linear_batch_norm(x1, g1, b1))
    assert jnp.allclose(out1, _reference(x1, g1, b1), atol=2e-5, rtol=2e-5), \
        "mismatch (case 1)"

    # Case 2: D a multiple of 128 (single 384-lane tile), non-trivial affine.
    N2, D2 = 16, 384
    k1, k2, k3 = jax.random.split(jax.random.PRNGKey(1), 3)
    x2 = jax.random.normal(k1, (N2, D2), dtype=jnp.float32)
    g2 = 1.0 + 0.1 * jax.random.normal(k2, (D2,), dtype=jnp.float32)
    b2 = 0.1 * jax.random.normal(k3, (D2,), dtype=jnp.float32)
    out2 = jax.block_until_ready(linear_batch_norm(x2, g2, b2))
    assert jnp.allclose(out2, _reference(x2, g2, b2), atol=2e-5, rtol=2e-5), \
        "mismatch (case 2)"

    # Case 3: ragged feature dim (D % 128 != 0), multi-step grid with a masked
    # tail tile (max_td=128 -> 3 tiles).  No wrapper pad/slice involved.
    N3, D3 = 16, 300
    k1, k2, k3 = jax.random.split(jax.random.PRNGKey(2), 3)
    x3 = jax.random.normal(k1, (N3, D3), dtype=jnp.float32)
    g3 = 1.0 + 0.1 * jax.random.normal(k2, (D3,), dtype=jnp.float32)
    b3 = 0.1 * jax.random.normal(k3, (D3,), dtype=jnp.float32)
    out3 = jax.block_until_ready(linear_batch_norm(x3, g3, b3, max_td=128))
    assert jnp.allclose(out3, _reference(x3, g3, b3), atol=2e-5, rtol=2e-5), \
        "mismatch (case 3)"

    # Case 4: two-pass (N-tiled) large-batch fallback path, ragged in N and D.
    N4, D4 = 20, 200
    k1, k2, k3 = jax.random.split(jax.random.PRNGKey(3), 3)
    x4 = jax.random.normal(k1, (N4, D4), dtype=jnp.float32)
    g4 = 1.0 + 0.1 * jax.random.normal(k2, (D4,), dtype=jnp.float32)
    b4 = 0.1 * jax.random.normal(k3, (D4,), dtype=jnp.float32)
    out4 = jax.block_until_ready(
        linear_batch_norm(x4, g4, b4, force_two_pass=True))
    assert jnp.allclose(out4, _reference(x4, g4, b4), atol=2e-5, rtol=2e-5), \
        "mismatch (case 4)"

    print("KERNEL_OK")
</pallas_src>

<mosaic_0001>
module attributes {stable_mosaic.version = 11 : i64} {
  func.func @_fused_bn_kernel(%arg0: i32, %arg1: memref<8x32xf32, #tpu.memory_space<vmem>>, %arg2: memref<1x32xf32, #tpu.memory_space<vmem>>, %arg3: memref<1x32xf32, #tpu.memory_space<vmem>>, %arg4: memref<8x32xf32, #tpu.memory_space<vmem>>) attributes {dimension_semantics = [#tpu.dimension_semantics<parallel>], iteration_bounds = array<i64: 1>, scalar_prefetch = 0 : i64, scratch_operands = 0 : i64, tpu.core_type = #tpu.core_type<tc>, window_params = [{transform_indices = @transform_0, window_bounds = array<i64: 8, 32>}, {transform_indices = @transform_1, window_bounds = array<i64: 1, 32>}, {transform_indices = @transform_2, window_bounds = array<i64: 1, 32>}, {transform_indices = @transform_3, window_bounds = array<i64: 8, 32>}]} {
    %c0 = arith.constant 0 : index
    %c0_0 = arith.constant 0 : index
    %0 = vector.load %arg1[%c0, %c0_0] : memref<8x32xf32, #tpu.memory_space<vmem>>, vector<8x32xf32>
    %cst = arith.constant dense<0.000000e+00> : vector<32xf32>
    %1 = vector.multi_reduction <add>, %0, %cst [0] : vector<8x32xf32> to vector<32xf32>
    %2 = vector.shape_cast %1 : vector<32xf32> to vector<1x32xf32>
    %cst_1 = arith.constant 1.250000e-01 : f32
    %3 = vector.broadcast %cst_1 : f32 to vector<1x32xf32>
    %4 = arith.mulf %2, %3 : vector<1x32xf32>
    %5 = arith.mulf %0, %0 : vector<8x32xf32>
    %cst_2 = arith.constant dense<0.000000e+00> : vector<32xf32>
    %6 = vector.multi_reduction <add>, %5, %cst_2 [0] : vector<8x32xf32> to vector<32xf32>
    %7 = vector.shape_cast %6 : vector<32xf32> to vector<1x32xf32>
    %cst_3 = arith.constant 1.250000e-01 : f32
    %8 = vector.broadcast %cst_3 : f32 to vector<1x32xf32>
    %9 = arith.mulf %7, %8 : vector<1x32xf32>
    %10 = arith.mulf %4, %4 : vector<1x32xf32>
    %11 = arith.subf %9, %10 : vector<1x32xf32>
    %cst_4 = arith.constant 0.000000e+00 : f32
    %12 = vector.broadcast %cst_4 : f32 to vector<1x32xf32>
    %13 = arith.maximumf %11, %12 : vector<1x32xf32>
    %cst_5 = arith.constant 9.99999974E-6 : f32
    %14 = vector.broadcast %cst_5 : f32 to vector<1x32xf32>
    %15 = arith.addf %13, %14 : vector<1x32xf32>
    %16 = math.rsqrt %15 : vector<1x32xf32>
    %c0_6 = arith.constant 0 : index
    %c0_7 = arith.constant 0 : index
    %17 = vector.load %arg2[%c0_6, %c0_7] : memref<1x32xf32, #tpu.memory_space<vmem>>, vector<1x32xf32>
    %18 = arith.mulf %17, %16 : vector<1x32xf32>
    %c0_8 = arith.constant 0 : index
    %c0_9 = arith.constant 0 : index
    %19 = vector.load %arg3[%c0_8, %c0_9] : memref<1x32xf32, #tpu.memory_space<vmem>>, vector<1x32xf32>
    %20 = arith.mulf %4, %18 : vector<1x32xf32>
    %21 = arith.subf %19, %20 : vector<1x32xf32>
    %22 = vector.broadcast %18 : vector<1x32xf32> to vector<8x32xf32>
    %23 = arith.mulf %0, %22 : vector<8x32xf32>
    %24 = vector.broadcast %21 : vector<1x32xf32> to vector<8x32xf32>
    %25 = arith.addf %23, %24 : vector<8x32xf32>
    %c0_10 = arith.constant 0 : index
    %c0_11 = arith.constant 0 : index
    %26 = vector.load %arg4[%c0_10, %c0_11] : memref<8x32xf32, #tpu.memory_space<vmem>>, vector<8x32xf32>
    tpu.vector_store %arg4[%c0_10, %c0_11], %25 {strides = array<i32>} : memref<8x32xf32, #tpu.memory_space<vmem>>, vector<8x32xf32>,
    return
  }
  func.func @transform_0(%arg0: i32) -> (i32, i32) {
    %c0_i32 = arith.constant 0 : i32
    %c0_i32_0 = arith.constant 0 : i32
    return %c0_i32, %arg0 : i32, i32
  }
  func.func @transform_1(%arg0: i32) -> (i32, i32) {
    %c0_i32 = arith.constant 0 : i32
    %c0_i32_0 = arith.constant 0 : i32
    return %c0_i32, %arg0 : i32, i32
  }
  func.func @transform_2(%arg0: i32) -> (i32, i32) {
    %c0_i32 = arith.constant 0 : i32
    %c0_i32_0 = arith.constant 0 : i32
    return %c0_i32, %arg0 : i32, i32
  }
  func.func @transform_3(%arg0: i32) -> (i32, i32) {
    %c0_i32 = arith.constant 0 : i32
    %c0_i32_0 = arith.constant 0 : i32
    return %c0_i32, %arg0 : i32, i32
  }
}

</mosaic_0001>

<bundles_post_ra>
// kernel: tpu_custom_call.1
= control target key start
LH: loop header
LB: loop body
LE: loop exit
PB: predicated region body
PF: predicated region fallthrough
CT: control target
= control target key end

     0   :  { %8 = vsyncpa [#allocation3], 0  ;;  %s285_s0 = inlined_call_operand.hbm [shape: f32[8,32], index: 0, kind: input, shape index: {}]   ;;  %s286_s1 = inlined_call_operand.hbm [shape: f32[1,32], index: 1, kind: input, shape index: {}]   ;;  %s287_s2 = inlined_call_operand.hbm [shape: f32[1,32], index: 2, kind: input, shape index: {}]   ;;  %s288_s3 = inlined_call_operand.hbm [shape: f32[8,32], index: 3, kind: output, shape index: {}]  }
   0x1   :  { %9 = vsyncpa [#allocation6], 0 }
   0x2   :  { %10 = vsyncpa [#allocation4], 0  ;;  %s210_s12 = smov [#allocation5]   ;;  %s211_s14 = smov [#allocation2]  }
   0x3   :  { %s27_s13 = sshll.u32 %s210_s12, 4  ;;  %s17_s15 = sshll.u32 %s211_s14, 4  ;;  %s28_s13 = int_to_ptr.vmem [resolvable:$true] %s27_s13  ;;  %s18_s15 = int_to_ptr.vmem [resolvable:$true] %s17_s15 }
   0x4   :  { %s116_s18 = scalar_lea.hbm %s286_s1, 16 }
   0x5   :  { %p117_p0 = scmp.ne.s32.totalorder %s286_s1, %s116_s18  ;;  %p120_p1 = scmp.lt.u32.totalorder %s116_s18, %s286_s1 }
   0x7   :  { %p122_p2 = pnand %p120_p1, %p117_p0 }
   0x9   :  { %125 = shalt.err (!%p122_p2)
}
   0xa   :  { %s126_s23 = scalar_lea.vmem %s28_s13, 16  ;;  %s130_s24 = scalar_lea.vmem %s28_s13, 32 }
   0xb   :  { %p127_p3 = scmp.ne.s32.totalorder %s28_s13, %s126_s23  ;;  %p131_p4 = scmp.lt.s32.totalorder %s28_s13, %s28_s13 }
   0xc   :  { %p132_p5 = scmp.lt.s32.totalorder %s130_s24, %s126_s23 }
   0xe   :  { %p133_p6 = por %p132_p5, %p131_p4 }
  0x10   :  { %p134_p7 = pnand %p133_p6, %p127_p3 }
  0x12   :  { %137 = shalt.err (!%p134_p7)
}
  0x13   :  { %30 = dma.hbm_to_vmem [thread:$0]  %s286_s1, 16, %s28_s13, [#allocation6]  }
  0x14   :  { %s138_s29 = scalar_lea.hbm %s285_s0, 128 }
  0x15   :  { %p139_p8 = scmp.ne.s32.totalorder %s285_s0, %s138_s29  ;;  %p142_p9 = scmp.lt.u32.totalorder %s138_s29, %s285_s0 }
  0x17   :  { %p144_p10 = pnand %p142_p9, %p139_p8 }
  0x19   :  { %147 = shalt.err (!%p144_p10)
}
  0x1a   :  { %s148_s7 = scalar_lea.vmem %s18_s15, 128  ;;  %p153_p12 = scmp.lt.s32.totalorder %s18_s15, %s18_s15 }
  0x1b   :  { %p149_p11 = scmp.ne.s32.totalorder %s18_s15, %s148_s7  ;;  %p154_p13 = scmp.lt.s32.totalorder %s148_s7, %s148_s7 }
  0x1d   :  { %p155_p0 = por %p154_p13, %p153_p12 }
  0x1f   :  { %p156_p1 = pnand %p155_p0, %p149_p11 }
  0x21   :  { %159 = shalt.err (!%p156_p1)
}
  0x22   :  { %20 = dma.hbm_to_vmem [thread:$0]  %s285_s0, 128, %s18_s15, [#allocation3]  }
  0x23   :  { %s212_s9 = smov [#allocation7]   ;;  %s160_s13 = scalar_lea.hbm %s287_s2, 16 }
  0x24   :  { %s37_s10 = sshll.u32 %s212_s9, 4  ;;  %p161_p2 = scmp.ne.s32.totalorder %s287_s2, %s160_s13  ;;  %s38_s10 = int_to_ptr.vmem [resolvable:$true] %s37_s10 }
  0x25   :  { %p164_p3 = scmp.lt.u32.totalorder %s160_s13, %s287_s2 }
  0x27   :  { %p166_p4 = pnand %p164_p3, %p161_p2 }
  0x29   :  { %169 = shalt.err (!%p166_p4)
}
  0x2a   :  { %s170_s19 = scalar_lea.vmem %s38_s10, 16  ;;  %s174_s0 = scalar_lea.vmem %s38_s10, 32 }
  0x2b   :  { %p171_p5 = scmp.ne.s32.totalorder %s38_s10, %s170_s19  ;;  %p175_p6 = scmp.lt.s32.totalorder %s38_s10, %s38_s10 }
  0x2c   :  { %p176_p7 = scmp.lt.s32.totalorder %s174_s0, %s170_s19 }
  0x2e   :  { %p177_p8 = por %p176_p7, %p175_p6 }
  0x30   :  { %p178_p9 = pnand %p177_p8, %p171_p5 }
  0x32   :  { %181 = shalt.err (!%p178_p9)
}
  0x33   :  { %40 = dma.hbm_to_vmem [thread:$0]  %s287_s2, 16, %s38_s10, [#allocation6]  }
  0x34   :  { %204 = dma.done.wait [#allocation3], 128  }
  0x35   :  { %205 = vsyncadd [#allocation3], 4294967168 }
  0x36   :  { %206 = dma.done.wait [#allocation6], 32  }
  0x37   :  { %207 = vsyncadd [#allocation6], 4294967264  ;;  %vm51_vm0 = vcmask 261120   ;;  %v50_v0 = vld [vmem:[#allocation2] sm:$0xff]  ;;  %v80_v22 = vlaneseq  ;;  %v74_v24 = vld [vmem:[#allocation5] sm:$0x1] }
  0x38   :  { %v52_v1 = vsel %vm51_vm0, %v50_v0, 0.0  ;;  %v60_v2 = vmul.f32 %v50_v0, %v50_v0  ;;  %v76_v28 = vld [vmem:[#allocation7] sm:$0x1]  ;;  %s213_s2 = smov [#allocation8]  }
  0x39   :  { %v53_v3 = vrot.slane %v52_v1, 4  ;;  %v81_v23 = vshrl.u32 %v80_v22, 7  ;;  %s100_s21 = sshll.u32 %s213_s2, 4  ;;  %s101_s21 = int_to_ptr.vmem [resolvable:$true] %s100_s21 }
  0x3a   :  { %v61_v4 = vsel %vm51_vm0, %v60_v2, 0.0  ;;  %s182_s22 = scalar_lea.vmem %s101_s21, 128  ;;  %p187_p11 = scmp.lt.s32.totalorder %s101_s21, %s101_s21 }
  0x3b   :  { %v54_v5 = vadd.f32 %v53_v3, %v52_v1  ;;  %v62_v6 = vrot.slane %v61_v4, 4  ;;  %v82_v25 = vsub.s32 0, %v81_v23  ;;  %p183_p10 = scmp.ne.s32.totalorder %s101_s21, %s182_s22  ;;  %p188_p12 = scmp.lt.s32.totalorder %s182_s22, %s182_s22 }
  0x3d   :  { %v55_v7 = vrot.slane %v54_v5, 2  ;;  %v63_v8 = vadd.f32 %v62_v6, %v61_v4  ;;  %p189_p13 = por %p188_p12, %p187_p11 }
  0x3f   :  { %v56_v9 = vadd.f32 %v55_v7, %v54_v5  ;;  %v64_v10 = vrot.slane %v63_v8, 2  ;;  %p190_p0 = pnand %p189_p13, %p183_p10 }
  0x41   :  { %v57_v11 = vrot.slane %v56_v9, 1  ;;  %v65_v12 = vadd.f32 %v64_v10, %v63_v8 }
  0x43   :  { %v58_v13 = vadd.f32 %v57_v11, %v56_v9  ;;  %v66_v14 = vrot.slane %v65_v12, 1 }
  0x45   :  { %v59_v15 = vmul.f32 0.125, %v58_v13  ;;  %v67_v16 = vadd.f32 %v66_v14, %v65_v12 }
  0x47   :  { %v68_v17 = vmul.f32 0.125, %v67_v16  ;;  %v69_v18 = vmul.f32 %v59_v15, %v59_v15 }
  0x49   :  { %v70_v19 = vsub.f32 %v68_v17, %v69_v18 }
  0x4b   :  { %v71_v20 = vmax.f32 %v70_v19, 0.0 }
  0x4d   :  { %v72_v21 = vadd.f32 1e-05, %v71_v20 }
  0x4f   :  { %114 = vrsqrt.f32 %v72_v21 }
  0x59   :  { %v115_v26 = vpop.eup %114 }
  0x5a   :  { %v75_v27 = vmul.f32 %v115_v26, %v74_v24 }
  0x5c   :  { %v77_v29 = vmul.f32 %v75_v27, %v59_v15  ;;  %v83_v30 = vrot.slane %v75_v27, %v82_v25 }
  0x5e   :  { %v78_v31 = vsub.f32 %v76_v28, %v77_v29  ;;  %v85_v32 = vmul.f32 %v83_v30, %v50_v0 }
  0x60   :  { %v90_v33 = vrot.slane %v78_v31, %v82_v25 }
  0x62   :  { %v92_v34 = vadd.f32 %v90_v33, %v85_v32 }
  0x64   :  { %93 = vst.msk [vmem:[#allocation8] sm:$0xff] %vm51_vm0, %v92_v34 }
  0x65   :  { %193 = shalt.err (!%p190_p0)
}
  0x66   :  { %s194_s25 = scalar_lea.hbm %s288_s3, 128 }
  0x67   :  { %p195_p1 = scmp.ne.s32.totalorder %s288_s3, %s194_s25  ;;  %p198_p2 = scmp.lt.u32.totalorder %s194_s25, %s288_s3 }
  0x69   :  { %p200_p3 = pnand %p198_p2, %p195_p1 }
  0x6b   :  { %203 = shalt.err (!%p200_p3)
}
  0x6c   :  { %103 = dma.vmem_to_hbm [thread:$0]  %s101_s21, 128, %s288_s3, [#allocation4]  }
  0x6d   :  { %208 = dma.done.wait [#allocation4], 128  }
  0x6e   :  { %209 = vsyncadd [#allocation4], 4294967168 }
  0x6f   :  { %107 = vsyncpa [#allocation3], 1 }
  0x70   :  { %108 = vsyncpa [#allocation6], 1 }
  0x71   :  { %109 = vsyncpa [#allocation4], 1 }

</bundles_post_ra>
